<compile_context>
chip_gen: v7x
topology: tpu7x:2x2x1
jax: 0.10.0
libtpu: 0.0.40
codegen_flags: <defaults>
</compile_context>

<pallas_src>
import jax
import jax.numpy as jnp
from jax.experimental import pallas as pl
from jax.experimental.pallas import tpu as pltpu

NN_LAYER_1 = 400
NN_LAYER_2 = 300

_LANE = 128


def _round_up(x, m):
    return (x + m - 1) // m * m


def _tb_cap_and_vmem_limit():
    """Generation-aware batch-tile cap + scoped-VMEM limit.

    v5e/v6e have 128 MiB VMEM -> 4096-row tiles; v7x has 64 MiB/TC -> 2048.
    Falls back to the v7x-safe setting if the hardware query is unavailable.
    """
    try:
        vmem = pltpu.get_tpu_info().vmem_capacity_bytes
    except Exception:
        vmem = 64 << 20
    if vmem >= (100 << 20):
        return 4096, 96 << 20
    return 2048, 48 << 20


_TB_CAP, _VMEM_LIMIT = _tb_cap_and_vmem_limit()


def _pick_tile(B):
    """Pick (batch_tile, padded_batch).

    Small B -> one tile (rounded to 16 for bf16 sublane packing).
    Larger B -> at least 2 tiles so the 'parallel' grid axis has work for both
    v7x TensorCores, capped at _TB_CAP rows per tile.
    """
    if B <= 256:
        tb = _round_up(max(B, 16), 16)
        return tb, tb
    tb = min(_TB_CAP, _round_up(-(-B // 2), 128))
    return tb, _round_up(B, tb)


def double_q_kernel(x_ref, w1_ref, b1_ref, w2_ref, b2_ref, w3_ref, b3_ref, q_ref):
    # fc1: single bf16 MXU dot over the pre-concatenated [state, action] input,
    # f32 accumulation; bias + ReLU in f32.
    h1 = jnp.dot(x_ref[...], w1_ref[...],
                 preferred_element_type=jnp.float32) + b1_ref[...]
    h1 = jnp.maximum(h1, 0.0)                                     # [TB, 512] f32

    # fc2: bf16 MXU dot, f32 accumulate, bias + ReLU in f32.
    h2 = jnp.dot(h1.astype(jnp.bfloat16), w2_ref[...],
                 preferred_element_type=jnp.float32) + b2_ref[...]
    h2 = jnp.maximum(h2, 0.0)                                     # [TB, 384] f32

    # fc_out (out_features == 1): VPU multiply + XLU cross-lane reduce — keeps
    # the saturated MXU free; padded hidden cols are zero so this is exact.
    q = jnp.sum(h2 * w3_ref[...], axis=-1, keepdims=True)         # [TB, 1]
    q_ref[...] = (q + b3_ref[...]).astype(q_ref.dtype)            # [TB, 1] f32


def double_q_net(state, action, params):
    """Pallas forward of DoubleQNet. state: [B, S], action: [B, A] -> q: [B, 1]."""
    w1, b1, w2, b2, w3row, b3 = params
    B = state.shape[0]
    K = w1.shape[0]            # S + A
    H1P, H2P = w2.shape        # padded hidden sizes (512, 384)

    # Single fc1 input stream: concatenate once in the wrapper (negligible cost).
    x16 = jnp.concatenate([state, action], axis=1).astype(jnp.bfloat16)  # [B, K]

    tb, b_pad = _pick_tile(B)
    if b_pad != B:
        x16 = jnp.pad(x16, ((0, b_pad - B), (0, 0)))
    n_tiles = b_pad // tb

    const = lambda i: (0, 0)   # weights/biases: same block every step -> VMEM-resident

    grid_spec = pltpu.PrefetchScalarGridSpec(
        num_scalar_prefetch=0,
        grid=(n_tiles,),
        in_specs=[
            pl.BlockSpec((tb, K), lambda i: (i, 0)),   # [state|action] tile (bf16)
            pl.BlockSpec((K, H1P), const),             # W1            (bf16)
            pl.BlockSpec((1, H1P), const),             # b1            (f32)
            pl.BlockSpec((H1P, H2P), const),           # W2            (bf16)
            pl.BlockSpec((1, H2P), const),             # b2            (f32)
            pl.BlockSpec((1, H2P), const),             # w3 row        (f32)
            pl.BlockSpec((1, 1), const),               # b3            (f32)
        ],
        # True [tb, 1] output column: 4 B/row of HBM writeback (vs 512 B/row for
        # a 128-lane f32 slab); last block dim equals the full array dim.
        out_specs=pl.BlockSpec((tb, 1), lambda i: (i, 0)),
    )

    out = pl.pallas_call(
        double_q_kernel,
        out_shape=jax.ShapeDtypeStruct((b_pad, 1), jnp.float32),
        grid_spec=grid_spec,
        compiler_params=pltpu.CompilerParams(
            dimension_semantics=("parallel",),   # shard batch tiles over v7x's 2 TCs
            vmem_limit_bytes=_VMEM_LIMIT),
    )(x16, w1, b1, w2, b2, w3row, b3)

    return out[:B]


def init_params(key, state_dim, act_dim):
    """torch.nn.Linear-style init; weights stored [in, out] so y = x @ W + b."""
    def linear(k, fan_in, fan_out):
        kw, kb = jax.random.split(k)
        bound = 1.0 / jnp.sqrt(fan_in)
        w = jax.random.uniform(kw, (fan_in, fan_out), jnp.float32, -bound, bound)
        b = jax.random.uniform(kb, (1, fan_out), jnp.float32, -bound, bound)
        return w, b

    k1, k2, k3 = jax.random.split(key, 3)
    w1, b1 = linear(k1, state_dim + act_dim, NN_LAYER_1)
    w2, b2 = linear(k2, NN_LAYER_1, NN_LAYER_2)
    w3, b3 = linear(k3, NN_LAYER_2, 1)
    return (w1, b1, w2, b2, w3, b3)


def pack_params(raw):
    """One-time packing: zero-pad hidden dims to x128 (400->512, 300->384 — exact,
    no extra MXU passes), cast MXU weights to bf16; biases / final row stay f32."""
    w1, b1, w2, b2, w3, b3 = raw
    h1, h2 = w1.shape[1], w2.shape[1]
    h1p, h2p = _round_up(h1, _LANE), _round_up(h2, _LANE)

    w1p = jnp.pad(w1, ((0, 0), (0, h1p - h1))).astype(jnp.bfloat16)          # [S+A, 512]
    b1p = jnp.pad(b1, ((0, 0), (0, h1p - h1)))                               # [1, 512] f32
    w2p = jnp.pad(w2, ((0, h1p - h1), (0, h2p - h2))).astype(jnp.bfloat16)   # [512, 384]
    b2p = jnp.pad(b2, ((0, 0), (0, h2p - h2)))                               # [1, 384] f32
    w3row = jnp.pad(w3[:, 0][None, :], ((0, 0), (0, h2p - h2)))              # [1, 384] f32
    b3s = b3.reshape(1, 1).astype(jnp.float32)                               # [1, 1]  f32
    return (w1p, b1p, w2p, b2p, w3row, b3s)


def _reference_f32(state, action, raw):
    w1, b1, w2, b2, w3, b3 = raw
    x = jnp.concatenate([state, action], axis=1)
    r = jnp.maximum(x @ w1 + b1, 0.0)
    r = jnp.maximum(r @ w2 + b2, 0.0)
    return r @ w3 + b3


def _reference_bf16(state, action, raw):
    """Mirrors the kernel's exact quantization (bf16 MXU inputs, f32 acc,
    f32 final multiply-reduce)."""
    w1, b1, w2, b2, w3, b3 = raw
    x = jnp.concatenate([state, action], axis=1).astype(jnp.bfloat16)
    h1 = jnp.maximum(
        jnp.dot(x, w1.astype(jnp.bfloat16),
                preferred_element_type=jnp.float32) + b1, 0.0)
    h2 = jnp.maximum(
        jnp.dot(h1.astype(jnp.bfloat16), w2.astype(jnp.bfloat16),
                preferred_element_type=jnp.float32) + b2, 0.0)
    return jnp.sum(h2 * w3[:, 0][None, :], axis=-1, keepdims=True) + b3


if __name__ == "__main__":
    key = jax.random.PRNGKey(0)
    k_s, k_a, k_p, k_s2, k_a2 = jax.random.split(key, 5)

    state_dim, act_dim = 16, 8
    raw = init_params(k_p, state_dim, act_dim)
    params = pack_params(raw)
    fwd = jax.jit(double_q_net)

    # Case 1: small batch (single grid tile).
    batch = 8
    state = jax.random.normal(k_s, (batch, state_dim), jnp.float32)
    action = jax.random.normal(k_a, (batch, act_dim), jnp.float32)
    q = fwd(state, action, params)
    jax.block_until_ready(q)
    assert q.shape == (batch, 1)
    assert jnp.allclose(q, _reference_bf16(state, action, raw), atol=1e-3, rtol=1e-3)
    assert jnp.allclose(q, _reference_f32(state, action, raw), atol=5e-2, rtol=5e-2)

    # Case 2: mid-size batch -> two grid tiles + batch padding sliced off.
    batch2 = 300
    state2 = jax.random.normal(k_s2, (batch2, state_dim), jnp.float32)
    action2 = jax.random.normal(k_a2, (batch2, act_dim), jnp.float32)
    q2 = fwd(state2, action2, params)
    jax.block_until_ready(q2)
    assert q2.shape == (batch2, 1)
    assert jnp.allclose(q2, _reference_bf16(state2, action2, raw), atol=1e-3, rtol=1e-3)
    assert jnp.allclose(q2, _reference_f32(state2, action2, raw), atol=5e-2, rtol=5e-2)

    print("KERNEL_OK")
</pallas_src>

<mosaic_0001>
module attributes {stable_mosaic.version = 11 : i64} {
  func.func @double_q_kernel(%arg0: i32, %arg1: memref<16x24xbf16, #tpu.memory_space<vmem>>, %arg2: memref<24x512xbf16, #tpu.memory_space<vmem>>, %arg3: memref<1x512xf32, #tpu.memory_space<vmem>>, %arg4: memref<512x384xbf16, #tpu.memory_space<vmem>>, %arg5: memref<1x384xf32, #tpu.memory_space<vmem>>, %arg6: memref<1x384xf32, #tpu.memory_space<vmem>>, %arg7: memref<1x1xf32, #tpu.memory_space<vmem>>, %arg8: memref<16x1xf32, #tpu.memory_space<vmem>>) attributes {dimension_semantics = [#tpu.dimension_semantics<parallel>], iteration_bounds = array<i64: 1>, scalar_prefetch = 0 : i64, scratch_operands = 0 : i64, tpu.core_type = #tpu.core_type<tc>, window_params = [{transform_indices = @transform_0, window_bounds = array<i64: 16, 24>}, {pipeline_mode = #tpu.pipeline_mode<synchronous>, transform_indices = @transform_1, window_bounds = array<i64: 24, 512>}, {pipeline_mode = #tpu.pipeline_mode<synchronous>, transform_indices = @transform_2, window_bounds = array<i64: 1, 512>}, {pipeline_mode = #tpu.pipeline_mode<synchronous>, transform_indices = @transform_3, window_bounds = array<i64: 512, 384>}, {pipeline_mode = #tpu.pipeline_mode<synchronous>, transform_indices = @transform_4, window_bounds = array<i64: 1, 384>}, {pipeline_mode = #tpu.pipeline_mode<synchronous>, transform_indices = @transform_5, window_bounds = array<i64: 1, 384>}, {pipeline_mode = #tpu.pipeline_mode<synchronous>, transform_indices = @transform_6, window_bounds = array<i64: 1, 1>}, {transform_indices = @transform_7, window_bounds = array<i64: 16, 1>}]} {
    %c0 = arith.constant 0 : index
    %c0_0 = arith.constant 0 : index
    %0 = vector.load %arg1[%c0, %c0_0] : memref<16x24xbf16, #tpu.memory_space<vmem>>, vector<16x24xbf16>
    %c0_1 = arith.constant 0 : index
    %c0_2 = arith.constant 0 : index
    %1 = vector.load %arg2[%c0_1, %c0_2] : memref<24x512xbf16, #tpu.memory_space<vmem>>, vector<24x512xbf16>
    %cst = arith.constant dense<0.000000e+00> : vector<16x512xf32>
    %2 = tpu.matmul %0, %1, %cst {dimension_numbers = #tpu.dot_dimension_numbers<[1], [0], [0], [1], [0, 0, 1, 1], [], []>} : vector<16x24xbf16>, vector<24x512xbf16>, vector<16x512xf32> -> vector<16x512xf32>
    %c0_3 = arith.constant 0 : index
    %c0_4 = arith.constant 0 : index
    %3 = vector.load %arg3[%c0_3, %c0_4] : memref<1x512xf32, #tpu.memory_space<vmem>>, vector<1x512xf32>
    %4 = vector.broadcast %3 : vector<1x512xf32> to vector<16x512xf32>
    %5 = arith.addf %2, %4 : vector<16x512xf32>
    %cst_5 = arith.constant 0.000000e+00 : f32
    %6 = vector.broadcast %cst_5 : f32 to vector<16x512xf32>
    %7 = arith.maximumf %5, %6 : vector<16x512xf32>
    %8 = arith.truncf %7 : vector<16x512xf32> to vector<16x512xbf16>
    %c0_6 = arith.constant 0 : index
    %c0_7 = arith.constant 0 : index
    %9 = vector.load %arg4[%c0_6, %c0_7] : memref<512x384xbf16, #tpu.memory_space<vmem>>, vector<512x384xbf16>
    %cst_8 = arith.constant dense<0.000000e+00> : vector<16x384xf32>
    %10 = tpu.matmul %8, %9, %cst_8 {dimension_numbers = #tpu.dot_dimension_numbers<[1], [0], [0], [1], [0, 0, 1, 1], [], []>} : vector<16x512xbf16>, vector<512x384xbf16>, vector<16x384xf32> -> vector<16x384xf32>
    %c0_9 = arith.constant 0 : index
    %c0_10 = arith.constant 0 : index
    %11 = vector.load %arg5[%c0_9, %c0_10] : memref<1x384xf32, #tpu.memory_space<vmem>>, vector<1x384xf32>
    %12 = vector.broadcast %11 : vector<1x384xf32> to vector<16x384xf32>
    %13 = arith.addf %10, %12 : vector<16x384xf32>
    %cst_11 = arith.constant 0.000000e+00 : f32
    %14 = vector.broadcast %cst_11 : f32 to vector<16x384xf32>
    %15 = arith.maximumf %13, %14 : vector<16x384xf32>
    %c0_12 = arith.constant 0 : index
    %c0_13 = arith.constant 0 : index
    %16 = vector.load %arg6[%c0_12, %c0_13] : memref<1x384xf32, #tpu.memory_space<vmem>>, vector<1x384xf32>
    %17 = vector.broadcast %16 : vector<1x384xf32> to vector<16x384xf32>
    %18 = arith.mulf %15, %17 : vector<16x384xf32>
    %cst_14 = arith.constant dense<0.000000e+00> : vector<16xf32>
    %19 = vector.multi_reduction <add>, %18, %cst_14 [1] : vector<16x384xf32> to vector<16xf32>
    %20 = vector.shape_cast %19 : vector<16xf32> to vector<16x1xf32>
    %c0_15 = arith.constant 0 : index
    %c0_16 = arith.constant 0 : index
    %21 = vector.load %arg7[%c0_15, %c0_16] : memref<1x1xf32, #tpu.memory_space<vmem>>, vector<1x1xf32>
    %22 = vector.broadcast %21 : vector<1x1xf32> to vector<16x1xf32>
    %23 = arith.addf %20, %22 : vector<16x1xf32>
    %c0_17 = arith.constant 0 : index
    %c0_18 = arith.constant 0 : index
    %24 = vector.load %arg8[%c0_17, %c0_18] : memref<16x1xf32, #tpu.memory_space<vmem>>, vector<16x1xf32>
    tpu.vector_store %arg8[%c0_17, %c0_18], %23 {strides = array<i32>} : memref<16x1xf32, #tpu.memory_space<vmem>>, vector<16x1xf32>,
    return
  }
  func.func @transform_0(%arg0: i32) -> (i32, i32) {
    %c0_i32 = arith.constant 0 : i32
    %c0_i32_0 = arith.constant 0 : i32
    return %arg0, %c0_i32 : i32, i32
  }
  func.func @transform_1(%arg0: i32) -> (i32, i32) {
    %c0_i32 = arith.constant 0 : i32
    %c0_i32_0 = arith.constant 0 : i32
    %c0_i32_1 = arith.constant 0 : i32
    return %c0_i32, %c0_i32_0 : i32, i32
  }
  func.func @transform_2(%arg0: i32) -> (i32, i32) {
    %c0_i32 = arith.constant 0 : i32
    %c0_i32_0 = arith.constant 0 : i32
    %c0_i32_1 = arith.constant 0 : i32
    return %c0_i32, %c0_i32_0 : i32, i32
  }
  func.func @transform_3(%arg0: i32) -> (i32, i32) {
    %c0_i32 = arith.constant 0 : i32
    %c0_i32_0 = arith.constant 0 : i32
    %c0_i32_1 = arith.constant 0 : i32
    return %c0_i32, %c0_i32_0 : i32, i32
  }
  func.func @transform_4(%arg0: i32) -> (i32, i32) {
    %c0_i32 = arith.constant 0 : i32
    %c0_i32_0 = arith.constant 0 : i32
    %c0_i32_1 = arith.constant 0 : i32
    return %c0_i32, %c0_i32_0 : i32, i32
  }
  func.func @transform_5(%arg0: i32) -> (i32, i32) {
    %c0_i32 = arith.constant 0 : i32
    %c0_i32_0 = arith.constant 0 : i32
    %c0_i32_1 = arith.constant 0 : i32
    return %c0_i32, %c0_i32_0 : i32, i32
  }
  func.func @transform_6(%arg0: i32) -> (i32, i32) {
    %c0_i32 = arith.constant 0 : i32
    %c0_i32_0 = arith.constant 0 : i32
    %c0_i32_1 = arith.constant 0 : i32
    return %c0_i32, %c0_i32_0 : i32, i32
  }
  func.func @transform_7(%arg0: i32) -> (i32, i32) {
    %c0_i32 = arith.constant 0 : i32
    %c0_i32_0 = arith.constant 0 : i32
    return %arg0, %c0_i32 : i32, i32
  }
}

</mosaic_0001>

<bundles_post_ra>
// kernel: double_q_net.1
= control target key start
LH: loop header
LB: loop body
LE: loop exit
PB: predicated region body
PF: predicated region fallthrough
CT: control target
= control target key end

     0   :  { %s1551_s0 = inlined_call_operand.vmem [shape: bf16[16,24], index: 0, kind: input, shape index: {}]   ;;  %s1552_s1 = inlined_call_operand.vmem [shape: bf16[24,512], index: 1, kind: input, shape index: {}]   ;;  %s1553_s2 = inlined_call_operand.vmem [shape: f32[1,512], index: 2, kind: input, shape index: {}]   ;;  %s1554_s3 = inlined_call_operand.hbm [shape: bf16[512,384], index: 3, kind: input, shape index: {}]   ;;  %s1555_s4 = inlined_call_operand.vmem [shape: f32[1,384], index: 4, kind: input, shape index: {}]   ;;  %s1556_s5 = inlined_call_operand.vmem [shape: f32[1,384], index: 5, kind: input, shape index: {}]   ;;  %s1557_s6 = inlined_call_operand.<no memory space> [shape: f32[1,1], index: 6, kind: input, shape index: {}]   ;;  %s1558_s7 = inlined_call_operand.vmem [shape: f32[16,1], index: 7, kind: output, shape index: {}]  }
   0x1   :  { %v12_v0 = vstv %s1557_s6 }
   0x2   :  { %13 = vst [vmem:[#allocation2] sm:$0x1] %v12_v0 }
   0x3   :  { %14 = vsyncpa [#allocation4], 0  ;;  %s1431_s26 = smov [#allocation3]   ;;  %s1407_s30 = scalar_lea.hbm %s1554_s3, 12288 }
   0x4   :  { %s26_s27 = sshll.u32 %s1431_s26, 4  ;;  %p1408_p0 = scmp.ne.s32.totalorder %s1554_s3, %s1407_s30  ;;  %s27_s27 = int_to_ptr.vmem [resolvable:$true] %s26_s27 }
   0x5   :  { %p1411_p1 = scmp.lt.u32.totalorder %s1407_s30, %s1554_s3 }
   0x7   :  { %p1413_p2 = pnand %p1411_p1, %p1408_p0 }
   0x9   :  { %1416 = shalt.err (!%p1413_p2)
}
   0xa   :  { %s1417_s6 = scalar_lea.vmem %s27_s27, 12288  ;;  %p1422_p4 = scmp.lt.s32.totalorder %s27_s27, %s27_s27 }
   0xb   :  { %p1418_p3 = scmp.ne.s32.totalorder %s27_s27, %s1417_s6  ;;  %p1423_p5 = scmp.lt.s32.totalorder %s1417_s6, %s1417_s6 }
   0xd   :  { %p1424_p6 = por %p1423_p5, %p1422_p4 }
   0xf   :  { %p1425_p7 = pnand %p1424_p6, %p1418_p3 }
  0x11   :  { %1428 = shalt.err (!%p1425_p7)
}
  0x12   :  { %s1432_s12 = smov 192   ;;  %s1433_s13 = smov 12  }
  0x13   :  { %32 = dma.hbm_to_vmem [thread:$0]  %s1554_s3, 12288, %s27_s27, [#allocation4], %s1432_s12, %s1432_s12, %s1433_s13  }
  0x14   :  { %1429 = dma.done.wait [#allocation4], 12288  }
  0x15   :  { %1430 = vsyncadd [#allocation4], 4294955008  ;;  %v1434_v1 = vmov 0   ;;  %v1268_v2 = vld [vmem:[%s1552_s1 + $0x4] ss:$16 sps:$4 sm:$0xff]   ;;  %vm112_vm0 = vcmask 1043456  }
  0x16   :  { %157 = vmatprep.mubr.bf16.mxu1 %v1434_v1  ;;  %v1270_v3 = vld [vmem:[%s1552_s1] ss:$16 sps:$4 sm:$0xff]   ;;  %125 = vmatprep.subr.bf16.mxu1 %v1268_v2  ;;  %v1276_v7 = vld [vmem:[%s1552_s1 + $0xc] ss:$16 sps:$4 sm:$0xff]   ;;  %vm108_vm1 = vcmask 195584   ;;  %vm1094_vm2 = vcmask 7168  }
  0x17   :  { %v49_v4 = vld [vmem:[%s1552_s1 + $0x20] sm:$0xff]  ;;  %126 = vmatpush1.bf16.msra.mxu1 %v1270_v3  ;;  %v50_v9 = vld [vmem:[%s1552_s1 + $0x28] sm:$0xff] }
  0x18   :  { %v1108_v5 = vcombine.high %v49_v4, %v49_v4  ;;  %v1107_v6 = vcombine.low %v49_v4, %v49_v4  ;;  %v1279_v10 = vld [vmem:[#allocation3 + $0x4] ss:$12 sps:$4 sm:$0xff]   ;;  %v1281_v11 = vld [vmem:[#allocation3] ss:$12 sps:$4 sm:$0xff]   ;;  %v1282_v13 = vld [vmem:[#allocation3 + $0x1c] ss:$12 sps:$4 sm:$0xff]   ;;  %v1110_v15 = vcombine.high %v50_v9, %v50_v9  ;;  %v1109_v16 = vcombine.low %v50_v9, %v50_v9 }
  0x19   :  { %v1273_v12 = vld [vmem:[%s1551_s0] sm:$0xff]   ;;  %v1274_v14 = vld [vmem:[%s1552_s1 + $0x8] ss:$16 sps:$4 sm:$0xff]   ;;  %880 = vmatprep.subr.bf16.mxu0 %v1279_v10 }
  0x1a   :  { %1111 = vmatprep.subr.msk.bf16.mxu1 %vm112_vm0, %v1108_v5  ;;  %v114_v8 = vsel %vm112_vm0, %v1107_v6, 0  ;;  %881 = vmatpush1.bf16.msra.mxu0 %v1281_v11  ;;  %v1284_v17 = vld [vmem:[#allocation3 + $0x18] ss:$12 sps:$4 sm:$0xff]   ;;  %v1285_v18 = vld [vmem:[#allocation3 + $0x34] ss:$12 sps:$4 sm:$0xff]   ;;  %v120_v19 = vsel %vm112_vm0, %v1109_v16, 0 }
  0x1b   :  { %128 = vmatpush1.bf16.msra.mxu1 %v114_v8  ;;  %882 = vmatprep.subr.bf16.mxu0 %v1282_v13  ;;  %v1287_v20 = vld [vmem:[#allocation3 + $0x30] ss:$12 sps:$4 sm:$0xff]   ;;  %v1288_v21 = vld [vmem:[#allocation3 + $0x4c] ss:$12 sps:$4 sm:$0xff]   ;;  %v1290_v22 = vld [vmem:[#allocation3 + $0x48] ss:$12 sps:$4 sm:$0xff]  }
  0x1c   :  { %168 = vmatprep.subr.bf16.mxu1 %v1276_v7  ;;  %v1305_v23 = vld [vmem:[#allocation3 + $0xc8] ss:$12 sps:$4 sm:$0xff]   ;;  %v1291_v24 = vld [vmem:[#allocation3 + $0x64] ss:$12 sps:$4 sm:$0xff]   ;;  %v1293_v26 = vld [vmem:[#allocation3 + $0x60] ss:$12 sps:$4 sm:$0xff]  }
  0x1d   :  { %v1307_v25 = vld [vmem:[#allocation3 + $0x8] ss:$12 sps:$4 sm:$0xff]   ;;  %v1310_v28 = vld [vmem:[#allocation3 + $0xe0] ss:$12 sps:$4 sm:$0xff]   ;;  %v1296_v30 = vld [vmem:[#allocation3 + $0x78] ss:$12 sps:$4 sm:$0xff]  }
  0x1e   :  { %1112 = vmatmul.mubr.msk.bf16.vlgmr.msra.gmra.mrb[0].mxu1 %vm108_vm1, %v1273_v12  ;;  %883 = vmatpush1.bf16.msra.mxu0 %v1284_v17  ;;  %v1294_v27 = vld [vmem:[#allocation3 + $0x7c] ss:$12 sps:$4 sm:$0xff]   ;;  %v1312_v29 = vld [vmem:[#allocation3 + $0x20] ss:$12 sps:$4 sm:$0xff]   ;;  %v1315_v31 = vld [vmem:[#allocation3 + $0xf8] ss:$12 sps:$4 sm:$0xff]  }
  0x1f   :  { %169 = vmatpush1.bf16.msra.mxu1 %v1274_v14  ;;  %200 = vmatprep.mubr.bf16.mxu1 %v1434_v1  ;;  %v1317_v32 = vld [vmem:[#allocation3 + $0x38] ss:$12 sps:$4 sm:$0xff]   ;;  %v1297_v33 = vld [vmem:[#allocation3 + $0x94] ss:$12 sps:$4 sm:$0xff]   ;;  %v1320_v34 = vld [vmem:[#allocation3 + $0x110] ss:$12 sps:$4 sm:$0xff]   ;;  %v53_v1 = vlaneseq }
  0x20   :  { %1113 = vmatprep.subr.msk.bf16.mxu1 %vm112_vm0, %v1110_v15  ;;  %884 = vmatprep.subr.bf16.mxu0 %v1285_v18  ;;  %v1299_v35 = vld [vmem:[#allocation3 + $0x90] ss:$12 sps:$4 sm:$0xff]   ;;  %v1300_v37 = vld [vmem:[#allocation3 + $0xac] ss:$12 sps:$4 sm:$0xff]   ;;  %v1325_v38 = vld [vmem:[#allocation3 + $0x128] ss:$12 sps:$4 sm:$0xff]  }
  0x21   :  { %v1322_v36 = vld [vmem:[#allocation3 + $0x50] ss:$12 sps:$4 sm:$0xff]   ;;  %v1302_v39 = vld [vmem:[#allocation3 + $0xa8] ss:$12 sps:$4 sm:$0xff]   ;;  %v1330_v42 = vld [vmem:[#allocation3 + $0x140] ss:$12 sps:$4 sm:$0xff]  }
  0x22   :  { %885 = vmatpush1.bf16.msra.mxu0 %v1287_v20  ;;  %v1327_v40 = vld [vmem:[#allocation3 + $0x68] ss:$12 sps:$4 sm:$0xff]   ;;  %v1303_v41 = vld [vmem:[#allocation3 + $0xc4] ss:$12 sps:$4 sm:$0xff]   ;;  %v1306_v43 = vld [vmem:[#allocation3 + $0xc0] ss:$12 sps:$4 sm:$0xff]  }
  0x23   :  { %171 = vmatpush1.bf16.msra.mxu1 %v120_v19  ;;  %886 = vmatprep.subr.bf16.mxu0 %v1288_v21  ;;  %v1308_v44 = vld [vmem:[#allocation3 + $0xdc] ss:$12 sps:$4 sm:$0xff]   ;;  %v1332_v45 = vld [vmem:[#allocation3 + $0x80] ss:$12 sps:$4 sm:$0xff]   ;;  %v1311_v46 = vld [vmem:[#allocation3 + $0xd8] ss:$12 sps:$4 sm:$0xff]  }
  0x24   :  { %1212 = vmatprep.subr.bf16.mxu1 %v1305_v23  ;;  %v1313_v47 = vld [vmem:[#allocation3 + $0xf4] ss:$12 sps:$4 sm:$0xff]   ;;  %v1316_v48 = vld [vmem:[#allocation3 + $0xf0] ss:$12 sps:$4 sm:$0xff]   ;;  %v1318_v49 = vld [vmem:[#allocation3 + $0x10c] ss:$12 sps:$4 sm:$0xff]  }
  0x25   :  { %v1321_v50 = vld [vmem:[#allocation3 + $0x108] ss:$12 sps:$4 sm:$0xff]   ;;  %v1323_v51 = vld [vmem:[#allocation3 + $0x124] ss:$12 sps:$4 sm:$0xff]   ;;  %v1326_v52 = vld [vmem:[#allocation3 + $0x120] ss:$12 sps:$4 sm:$0xff]  }
  0x26   :  { %1114 = vmatmul.mubr.msk.bf16.vlgmr.msra.gmra.mrb[4].mxu1 %vm108_vm1, %v1273_v12  ;;  %887 = vmatpush1.bf16.msra.mxu0 %v1290_v22  ;;  %v1328_v53 = vld [vmem:[#allocation3 + $0x13c] ss:$12 sps:$4 sm:$0xff]   ;;  %v1331_v54 = vld [vmem:[#allocation3 + $0x138] ss:$12 sps:$4 sm:$0xff]   ;;  %v1333_v55 = vld [vmem:[#allocation3 + $0x154] ss:$12 sps:$4 sm:$0xff]  }
  0x27   :  { %1213 = vmatpush3.bf16.msra.mxu1 %v1307_v25  ;;  %888 = vmatprep.subr.bf16.mxu0 %v1291_v24  ;;  %v1335_v56 = vld [vmem:[#allocation3 + $0x158] ss:$12 sps:$4 sm:$0xff]   ;;  %v1336_v57 = vld [vmem:[#allocation3 + $0x150] ss:$12 sps:$4 sm:$0xff]   ;;  %v1341_v61 = vld [vmem:[#allocation3 + $0x168] ss:$12 sps:$4 sm:$0xff]  }
  0x28   :  { %1214 = vmatprep.subr.bf16.mxu1 %v1310_v28  ;;  %v1337_v58 = vld [vmem:[#allocation3 + $0x98] ss:$12 sps:$4 sm:$0xff]   ;;  %v1340_v60 = vld [vmem:[#allocation3 + $0x170] ss:$12 sps:$4 sm:$0xff]   ;;  %v1346_v0 = vld [vmem:[#allocation3 + $0x248] ss:$12 sps:$4 sm:$0xff]  }
  0x29   :  { %v1338_v59 = vld [vmem:[#allocation3 + $0x16c] ss:$12 sps:$4 sm:$0xff]   ;;  %v1342_v62 = vld [vmem:[#allocation3 + $0xb0] ss:$12 sps:$4 sm:$0xff]   ;;  %v54_v2 = vshrl.u32 %v53_v1, 7 }
  0x2a   :  { %889 = vmatpush1.bf16.msra.mxu0 %v1293_v26  ;;  %v1345_v63 = vld [vmem:[#allocation3 + $0x184] ss:$12 sps:$4 sm:$0xff]   ;;  %v51_v4 = vld [vmem:[%s1553_s2] sm:$0xf] }
  0x2b   :  { %1215 = vmatpush3.bf16.msra.mxu1 %v1312_v29  ;;  %890 = vmatprep.subr.bf16.mxu0 %v1294_v27  ;;  %v1517_v3 = vsub.s32 0, %v54_v2  ;;  %v1522_v5 = vsub.s32 1, %v54_v2  ;;  %v1526_v11 = vsub.s32 2, %v54_v2  ;;  %v67_v14 = vsub.s32 3, %v54_v2  ;;  %v1343_v26 = vld [vmem:[#allocation3 + $0x180] ss:$12 sps:$4 sm:$0xff]  }
  0x2c   :  { %1216 = vmatprep.subr.bf16.mxu1 %v1315_v31  ;;  %v1347_v27 = vld [vmem:[#allocation3 + $0x188] ss:$12 sps:$4 sm:$0xff]   ;;  %v1377_v1 = vld [vmem:[#allocation3 + $0x218] ss:$12 sps:$4 sm:$0xff]  }
  0x2d   :  { %v56_v6 = vrot.slane %v51_v4, %v1517_v3  ;;  %v60_v7 = vrot.slane %v51_v4, %v1522_v5  ;;  %v64_v20 = vrot.slane %v51_v4, %v1526_v11  ;;  %v68_v23 = vrot.slane %v51_v4, %v67_v14  ;;  %v1350_v29 = vld [vmem:[#allocation3 + $0x19c] ss:$12 sps:$4 sm:$0xff]   ;;  %v1380_v2 = vld [vmem:[#allocation3 + $0x22c] ss:$12 sps:$4 sm:$0xff]  }
  0x2e   :  { %891 = vmatpush1.bf16.msra.mxu0 %v1296_v30  ;;  %v1351_v30 = vld [vmem:[#allocation3 + $0x260] ss:$12 sps:$4 sm:$0xff]   ;;  %v1381_v4 = vld [vmem:[#allocation3 + $0x2f0] ss:$12 sps:$4 sm:$0xff]  }
  0x2f   :  { %1217 = vmatpush3.bf16.msra.mxu1 %v1317_v32  ;;  %892 = vmatprep.subr.bf16.mxu0 %v1297_v33  ;;  %v1389_v14 = vld [vmem:[#allocation3 + $0x270] ss:$12 sps:$4 sm:$0xff]  }
  0x30   :  { %1218 = vmatprep.subr.bf16.mxu1 %v1320_v34 }
  0x32   :  { %893 = vmatpush1.bf16.msra.mxu0 %v1299_v35 }
  0x33   :  { %1219 = vmatpush3.bf16.msra.mxu1 %v1322_v36  ;;  %894 = vmatprep.subr.bf16.mxu0 %v1300_v37 }
  0x34   :  { %1220 = vmatprep.subr.bf16.mxu1 %v1325_v38  ;;  %v1348_v38 = vld [vmem:[#allocation3 + $0x198] ss:$12 sps:$4 sm:$0xff]  }
  0x36   :  { %895 = vmatpush1.bf16.msra.mxu0 %v1302_v39  ;;  %v1352_v39 = vld [vmem:[#allocation3 + $0x1a0] ss:$12 sps:$4 sm:$0xff]  }
  0x37   :  { %1221 = vmatpush3.bf16.msra.mxu1 %v1327_v40  ;;  %896 = vmatprep.subr.bf16.mxu0 %v1303_v41 }
  0x38   :  { %1222 = vmatprep.subr.bf16.mxu1 %v1330_v42  ;;  %v1355_v42 = vld [vmem:[#allocation3 + $0x1b4] ss:$12 sps:$4 sm:$0xff]  }
  0x3a   :  { %897 = vmatpush1.bf16.msra.mxu0 %v1306_v43  ;;  %v1356_v43 = vld [vmem:[#allocation3 + $0x278] ss:$12 sps:$4 sm:$0xff]  }
  0x3b   :  { %1223 = vmatpush3.bf16.msra.mxu1 %v1332_v45  ;;  %898 = vmatprep.subr.bf16.mxu0 %v1308_v44 }
  0x3c   :  { %1224 = vmatprep.subr.bf16.mxu1 %v1335_v56  ;;  %v1363_v56 = vld [vmem:[#allocation3 + $0x1e0] ss:$12 sps:$4 sm:$0xff]  }
  0x3e   :  { %899 = vmatpush1.bf16.msra.mxu0 %v1311_v46 }
  0x3f   :  { %900 = vmatprep.subr.bf16.mxu0 %v1313_v47  ;;  %1225 = vmatpush3.bf16.msra.mxu1 %v1337_v58  ;;  %v1353_v47 = vld [vmem:[#allocation3 + $0x1b0] ss:$12 sps:$4 sm:$0xff]  }
  0x40   :  { %1226 = vmatprep.subr.bf16.mxu1 %v1340_v60  ;;  %v1370_v58 = vld [vmem:[#allocation3 + $0x1fc] ss:$12 sps:$4 sm:$0xff]   ;;  %v1368_v60 = vld [vmem:[#allocation3 + $0x1f8] ss:$12 sps:$4 sm:$0xff]  }
  0x42   :  { %901 = vmatpush1.bf16.msra.mxu0 %v1316_v48  ;;  %v1357_v48 = vld [vmem:[#allocation3 + $0x1b8] ss:$12 sps:$4 sm:$0xff]  }
  0x43   :  { %902 = vmatprep.subr.bf16.mxu0 %v1318_v49  ;;  %1227 = vmatpush3.bf16.msra.mxu1 %v1342_v62  ;;  %v1375_v62 = vld [vmem:[#allocation3 + $0x214] ss:$12 sps:$4 sm:$0xff]  }
  0x44   :  { %1234 = vmatprep.subr.bf16.mxu1 %v1346_v0  ;;  %v1373_v0 = vld [vmem:[#allocation3 + $0x210] ss:$12 sps:$4 sm:$0xff]  }
  0x46   :  { %903 = vmatpush1.bf16.msra.mxu0 %v1321_v50  ;;  %v1360_v50 = vld [vmem:[#allocation3 + $0x1cc] ss:$12 sps:$4 sm:$0xff]  }
  0x47   :  { %904 = vmatprep.subr.bf16.mxu0 %v1323_v51  ;;  %v1361_v51 = vld [vmem:[#allocation3 + $0x290] ss:$12 sps:$4 sm:$0xff]  }
  0x4a   :  { %905 = vmatpush1.bf16.msra.mxu0 %v1326_v52  ;;  %v1358_v52 = vld [vmem:[#allocation3 + $0x1c8] ss:$12 sps:$4 sm:$0xff]  }
  0x4b   :  { %906 = vmatprep.subr.bf16.mxu0 %v1328_v53  ;;  %v1362_v53 = vld [vmem:[#allocation3 + $0x1d0] ss:$12 sps:$4 sm:$0xff]  }
  0x4e   :  { %907 = vmatpush1.bf16.msra.mxu0 %v1331_v54  ;;  %v1365_v54 = vld [vmem:[#allocation3 + $0x1e4] ss:$12 sps:$4 sm:$0xff]  }
  0x4f   :  { %908 = vmatprep.subr.bf16.mxu0 %v1333_v55  ;;  %v1366_v55 = vld [vmem:[#allocation3 + $0x2a8] ss:$12 sps:$4 sm:$0xff]  }
  0x52   :  { %909 = vmatpush1.bf16.msra.mxu0 %v1336_v57  ;;  %v1367_v57 = vld [vmem:[#allocation3 + $0x1e8] ss:$12 sps:$4 sm:$0xff]  }
  0x53   :  { %910 = vmatprep.subr.bf16.mxu0 %v1338_v59  ;;  %v1371_v59 = vld [vmem:[#allocation3 + $0x2c0] ss:$12 sps:$4 sm:$0xff]  }
  0x56   :  { %911 = vmatpush1.bf16.msra.mxu0 %v1341_v61  ;;  %v1372_v61 = vld [vmem:[#allocation3 + $0x200] ss:$12 sps:$4 sm:$0xff]  }
  0x57   :  { %923 = vmatprep.subr.bf16.mxu0 %v1345_v63  ;;  %v1376_v63 = vld [vmem:[#allocation3 + $0x2d8] ss:$12 sps:$4 sm:$0xff]  }
  0xf1   :  { %v159_v8 = vpop.f32.mrb[0].mxu1 }
  0xf2   :  { %v160_v9 = vadd.f32 %v159_v8, %v56_v6  ;;  %v161_v10 = vpop.f32.mrb[1].mxu1  ;;  %v1385_v8 = vld [vmem:[#allocation3 + $0x244] ss:$12 sps:$4 sm:$0xff]  }
  0xf3   :  { %v162_v12 = vadd.f32 %v161_v10, %v60_v7  ;;  %v163_v13 = vpop.f32.mrb[2].mxu1  ;;  %v1388_v10 = vld [vmem:[#allocation3 + $0x25c] ss:$12 sps:$4 sm:$0xff]  }
  0xf4   :  { %v164_v15 = vadd.f32 %v163_v13, %v56_v6  ;;  %v165_v16 = vpop.f32.mrb[3].mxu1  ;;  %v211_v18 = vmax.f32 %v160_v9, 0.0  ;;  %v1378_v6 = vld [vmem:[#allocation3 + $0x228] ss:$12 sps:$4 sm:$0xff]   ;;  %v1383_v9 = vld [vmem:[#allocation3 + $0x240] ss:$12 sps:$4 sm:$0xff]  }
  0xf5   :  { %v166_v17 = vadd.f32 %v165_v16, %v60_v7  ;;  %v212_v21 = vmax.f32 %v162_v12, 0.0  ;;  %v1382_v7 = vld [vmem:[#allocation3 + $0x230] ss:$12 sps:$4 sm:$0xff]   ;;  %v1386_v12 = vld [vmem:[#allocation3 + $0x258] ss:$12 sps:$4 sm:$0xff]  }
  0xf6   :  { %v215_v19 = vmax.f32 %v164_v15, 0.0  ;;  %v1391_v13 = vld [vmem:[#allocation3 + $0x274] ss:$12 sps:$4 sm:$0xff]   ;;  %v1394_v15 = vld [vmem:[#allocation3 + $0x28c] ss:$12 sps:$4 sm:$0xff]  }
  0xf7   :  { %v216_v22 = vmax.f32 %v166_v17, 0.0  ;;  %v1392_v16 = vld [vmem:[#allocation3 + $0x288] ss:$12 sps:$4 sm:$0xff]   ;;  %v1397_v17 = vld [vmem:[#allocation3 + $0x2a4] ss:$12 sps:$4 sm:$0xff]  }
  0xf8   :  { %v219_v24 = vpack.c.bf16 %v215_v19, %v211_v18  ;;  %v1395_v18 = vld [vmem:[#allocation3 + $0x2a0] ss:$12 sps:$4 sm:$0xff]   ;;  %v1400_v19 = vld [vmem:[#allocation3 + $0x2bc] ss:$12 sps:$4 sm:$0xff]  }
  0xf9   :  { %v220_v25 = vpack.c.bf16 %v216_v22, %v212_v21  ;;  %v202_v28 = vpop.f32.mrb[4].mxu1  ;;  %v1403_v21 = vld [vmem:[#allocation3 + $0x2d4] ss:$12 sps:$4 sm:$0xff]   ;;  %v1401_v22 = vld [vmem:[#allocation3 + $0x2d0] ss:$12 sps:$4 sm:$0xff]  }
  0xfa   :  { %v203_v31 = vadd.f32 %v202_v28, %v64_v20  ;;  %v204_v32 = vpop.f32.mrb[5].mxu1 }
  0xfb   :  { %912 = vmatprep.mubr.bf16.mxu0 %v220_v25  ;;  %998 = vmatprep.mubr.bf16.mxu1 %v220_v25  ;;  %v205_v33 = vadd.f32 %v204_v32, %v68_v23  ;;  %v206_v34 = vpop.f32.mrb[6].mxu1 }
  0xfc   :  { %913 = vmatmul.mubr.bf16.vlgmr.msra.gmra.mrb[0].mxu0 %v219_v24  ;;  %999 = vmatmul.mubr.bf16.vlgmr.msra.gmra.mrb[8].mxu1 %v219_v24  ;;  %v213_v35 = vmax.f32 %v203_v31, 0.0  ;;  %v207_v36 = vadd.f32 %v206_v34, %v64_v20  ;;  %v208_v37 = vpop.f32.mrb[7].mxu1  ;;  %v1398_v20 = vld [vmem:[#allocation3 + $0x2b8] ss:$12 sps:$4 sm:$0xff]   ;;  %v1404_v24 = vld [vmem:[#allocation3 + $0x2e8] ss:$12 sps:$4 sm:$0xff]  }
  0xfd   :  { %924 = vmatpush1.bf16.msra.mxu0 %v1343_v26  ;;  %1235 = vmatpush3.bf16.msra.mxu1 %v1347_v27  ;;  %v214_v40 = vmax.f32 %v205_v33, 0.0  ;;  %v209_v41 = vadd.f32 %v208_v37, %v68_v23  ;;  %v1406_v23 = vld [vmem:[#allocation3 + $0x2ec] ss:$12 sps:$4 sm:$0xff]   ;;  %v351_v31 = vld [vmem:[%s1555_s4] sm:$0x7] }
  0xfe   :  { %925 = vmatprep.subr.bf16.mxu0 %v1350_v29  ;;  %1236 = vmatprep.subr.bf16.mxu1 %v1351_v30  ;;  %v217_v44 = vmax.f32 %v207_v36, 0.0  ;;  %v364_v32 = vrot.slane %v351_v31, %v1526_v11 }
  0xff   :  { %v218_v45 = vmax.f32 %v209_v41, 0.0 }
 0x100   :  { %v1529_v46 = vpack.c.bf16 %v217_v44, %v213_v35  ;;  %v360_v44 = vrot.slane %v351_v31, %v1522_v5 }
 0x101   :  { %926 = vmatpush1.bf16.msra.mxu0 %v1348_v38  ;;  %1237 = vmatpush3.bf16.msra.mxu1 %v1352_v39  ;;  %v222_v49 = vpack.c.bf16 %v218_v45, %v214_v40 }
 0x102   :  { %927 = vmatprep.subr.bf16.mxu0 %v1355_v42  ;;  %1238 = vmatprep.subr.bf16.mxu1 %v1356_v43  ;;  %v356_v43 = vrot.slane %v351_v31, %v1517_v3 }
 0x103   :  { %1039 = vmatprep.mubr.bf16.mxu1 %v222_v49  ;;  %955 = vmatprep.mubr.bf16.mxu0 %v222_v49 }
 0x105   :  { %928 = vmatpush1.bf16.msra.mxu0 %v1353_v47  ;;  %1239 = vmatpush3.bf16.msra.mxu1 %v1357_v48 }
 0x106   :  { %929 = vmatprep.subr.bf16.mxu0 %v1360_v50  ;;  %1240 = vmatprep.subr.bf16.mxu1 %v1361_v51 }
 0x109   :  { %930 = vmatpush1.bf16.msra.mxu0 %v1358_v52  ;;  %1241 = vmatpush3.bf16.msra.mxu1 %v1362_v53 }
 0x10a   :  { %931 = vmatprep.subr.bf16.mxu0 %v1365_v54  ;;  %1242 = vmatprep.subr.bf16.mxu1 %v1366_v55 }
 0x10d   :  { %932 = vmatpush1.bf16.msra.mxu0 %v1363_v56  ;;  %1243 = vmatpush3.bf16.msra.mxu1 %v1367_v57 }
 0x10e   :  { %933 = vmatprep.subr.bf16.mxu0 %v1370_v58  ;;  %1244 = vmatprep.subr.bf16.mxu1 %v1371_v59 }
 0x111   :  { %934 = vmatpush1.bf16.msra.mxu0 %v1368_v60  ;;  %1245 = vmatpush3.bf16.msra.mxu1 %v1372_v61 }
 0x112   :  { %935 = vmatprep.subr.bf16.mxu0 %v1375_v62  ;;  %1246 = vmatprep.subr.bf16.mxu1 %v1376_v63 }
 0x115   :  { %936 = vmatpush1.bf16.msra.mxu0 %v1373_v0  ;;  %1247 = vmatpush3.bf16.msra.mxu1 %v1377_v1 }
 0x116   :  { %937 = vmatprep.subr.bf16.mxu0 %v1380_v2  ;;  %1248 = vmatprep.subr.bf16.mxu1 %v1381_v4 }
 0x119   :  { %938 = vmatpush1.bf16.msra.mxu0 %v1378_v6  ;;  %1249 = vmatpush3.bf16.msra.mxu1 %v1382_v7 }
 0x11a   :  { %939 = vmatprep.subr.bf16.mxu0 %v1385_v8 }
 0x11c   :  { %1040 = vmatmul.mubr.bf16.vlgmr.msra.gmra.mrb[12].mxu1 %v1529_v46 }
 0x11d   :  { %940 = vmatpush1.bf16.msra.mxu0 %v1383_v9  ;;  %v1211_v9 = vld [vmem:[#allocation2] ss:$0 sm:$0xff] }
 0x11e   :  { %941 = vmatprep.subr.bf16.mxu0 %v1388_v10 }
 0x121   :  { %942 = vmatpush1.bf16.msra.mxu0 %v1386_v12 }
 0x122   :  { %943 = vmatprep.subr.bf16.mxu0 %v1391_v13 }
 0x125   :  { %944 = vmatpush1.bf16.msra.mxu0 %v1389_v14 }
 0x126   :  { %945 = vmatprep.subr.bf16.mxu0 %v1394_v15 }
 0x129   :  { %946 = vmatpush1.bf16.msra.mxu0 %v1392_v16 }
 0x12a   :  { %947 = vmatprep.subr.bf16.mxu0 %v1397_v17 }
 0x12d   :  { %948 = vmatpush1.bf16.msra.mxu0 %v1395_v18 }
 0x12e   :  { %949 = vmatprep.subr.bf16.mxu0 %v1400_v19 }
 0x131   :  { %950 = vmatpush1.bf16.msra.mxu0 %v1398_v20 }
 0x132   :  { %951 = vmatprep.subr.bf16.mxu0 %v1403_v21 }
 0x135   :  { %952 = vmatpush1.bf16.msra.mxu0 %v1401_v22 }
 0x136   :  { %953 = vmatprep.subr.bf16.mxu0 %v1406_v23 }
 0x139   :  { %954 = vmatpush1.bf16.msra.mxu0 %v1404_v24 }
 0x13c   :  { %956 = vmatmul.mubr.bf16.vlgmr.msra.gmra.mrb[0].mxu0 %v1529_v46  ;;  %v1054_v46 = vld [vmem:[%s1556_s5] sm:$0x7] }
 0x13d   :  { %v1059_v48 = vrot.slane %v1054_v46, %v1517_v3  ;;  %v1063_v51 = vrot.slane %v1054_v46, %v1522_v5  ;;  %v1067_v59 = vrot.slane %v1054_v46, %v1526_v11 }
 0x1cf   :  { %v1228_v25 = vpop.f32.mrb[8].mxu1 }
 0x1d0   :  { %v1229_v26 = vpop.f32.mrb[9].mxu1 }
 0x1d1   :  { %v1230_v27 = vadd.f32 %v1229_v26, %v1228_v25  ;;  %v1231_v28 = vpop.f32.mrb[10].mxu1 }
 0x1d2   :  { %v1232_v29 = vpop.f32.mrb[11].mxu1 }
 0x1d3   :  { %v1233_v30 = vadd.f32 %v1232_v29, %v1231_v28  ;;  %v1001_v35 = vadd.f32 %v1230_v27, %v364_v32 }
 0x1d5   :  { %v1004_v39 = vadd.f32 %v1233_v30, %v364_v32 }
 0x1ef   :  { %v1250_v33 = vpop.f32.mrb[12].mxu1 }
 0x1f0   :  { %v1251_v34 = vpop.f32.mrb[13].mxu1 }
 0x1f1   :  { %v1252_v36 = vadd.f32 %v1251_v34, %v1250_v33  ;;  %v1253_v37 = vpop.f32.mrb[14].mxu1 }
 0x1f2   :  { %v1254_v38 = vpop.f32.mrb[15].mxu1 }
 0x1f3   :  { %v1042_v40 = vadd.f32 %v1252_v36, %v1001_v35  ;;  %v1255_v41 = vadd.f32 %v1254_v38, %v1253_v37 }
 0x1f5   :  { %v1045_v42 = vadd.f32 %v1255_v41, %v1004_v39  ;;  %v1050_v56 = vmax.f32 %v1042_v40, 0.0 }
 0x1f7   :  { %v1053_v62 = vmax.f32 %v1045_v42, 0.0  ;;  %v1073_v2 = vmul.f32 %v1067_v59, %v1050_v56 }
 0x1f9   :  { %v1076_v5 = vmul.f32 %v1067_v59, %v1053_v62 }
 0x20f   :  { %v957_v45 = vpop.f32.mrb[0].mxu0 }
 0x210   :  { %v1256_v47 = vadd.f32 %v957_v45, %v356_v43  ;;  %v959_v49 = vpop.f32.mrb[1].mxu0 }
 0x211   :  { %v1257_v50 = vadd.f32 %v959_v49, %v360_v44  ;;  %v961_v52 = vpop.f32.mrb[2].mxu0 }
 0x212   :  { %v1048_v53 = vmax.f32 %v1256_v47, 0.0  ;;  %v1258_v54 = vadd.f32 %v961_v52, %v356_v43  ;;  %v963_v55 = vpop.f32.mrb[3].mxu0 }
 0x213   :  { %v1049_v57 = vmax.f32 %v1257_v50, 0.0  ;;  %v1259_v58 = vadd.f32 %v963_v55, %v360_v44 }
 0x214   :  { %v1071_v60 = vmul.f32 %v1059_v48, %v1048_v53  ;;  %v1051_v61 = vmax.f32 %v1258_v54, 0.0 }
 0x215   :  { %v1072_v63 = vmul.f32 %v1063_v51, %v1049_v57  ;;  %v1052_v0 = vmax.f32 %v1259_v58, 0.0 }
 0x216   :  { %v1074_v1 = vmul.f32 %v1059_v48, %v1051_v61 }
 0x217   :  { %v1075_v3 = vmul.f32 %v1063_v51, %v1052_v0  ;;  %v1077_v4 = vadd.f32 %v1072_v63, %v1071_v60 }
 0x219   :  { %v1078_v6 = vadd.f32 %v1077_v4, %v1073_v2  ;;  %v1081_v7 = vadd.f32 %v1075_v3, %v1074_v1 }
 0x21b   :  { %1079 = vadd.xlane.f32.xlu0 %v1078_v6  ;;  %v1082_v8 = vadd.f32 %v1081_v7, %v1076_v5 }
 0x21f   :  { %1083 = vadd.xlane.f32.xlu0 %v1082_v8 }
 0x2a8   :  { %v1080_v10 = vpop.xlane.xlu0 %1079 }
 0x2a9   :  { %v1092_v12 = vadd.f32 %v1211_v9, %v1080_v10 }
 0x2ab   :  { %1095 = vst.msk [vmem:[%s1558_s7] sm:$0xff] %vm1094_vm2, %v1092_v12 }
 0x2ac   :  { %v1084_v11 = vpop.xlane.xlu0 %1083 }
 0x2ad   :  { %v1093_v13 = vadd.f32 %v1211_v9, %v1084_v11 }
 0x2af   :  { %1096 = vst.msk [vmem:[%s1558_s7 + $0x8] sm:$0xff] %vm1094_vm2, %v1093_v13 }
 0x2b0   :  { %1101 = vsyncpa [#allocation4], 1 }

</bundles_post_ra>
